<compile_context>
chip_gen: v7x
topology: tpu7x:2x2x1
jax: 0.10.0
libtpu: 0.0.40
codegen_flags: <defaults>
</compile_context>

<pallas_src>
import functools

import jax
import jax.numpy as jnp
from jax.experimental import pallas as pl
from jax.experimental.pallas import tpu as pltpu


def _round_up(x, m):
    return ((x + m - 1) // m) * m


@functools.lru_cache(maxsize=1)
def _chip_info():
    """(vmem_capacity_bytes, tensorcores_per_chip, mxu_row_quantum)."""
    kind = ""
    try:
        kind = jax.devices()[0].device_kind.lower()
    except Exception:
        pass
    vmem = 0
    try:
        vmem = int(pltpu.get_tpu_info().vmem_capacity_bytes)
    except Exception:
        vmem = 0
    if "v7" in kind:
        return (vmem or (64 << 20)), 2, 256
    if "v6" in kind:
        return (vmem or (128 << 20)), 1, 256
    if "v5" in kind:
        return (vmem or (128 << 20)), 1, 128
    # Unknown chip: assume the most restrictive VMEM, no forced TC split.
    return (vmem or (64 << 20)), 1, 128


def _mlp_head_kernel(x_ref, w1_ref, b1_ref, w2_ref, b2_ref, w3_ref, b3_ref,
                     o_ref, *, n_out):
    # fc1 + ReLU: MXU matmul with f32 accumulation; bias add / ReLU in f32.
    h1 = jnp.dot(x_ref[...], w1_ref[...], preferred_element_type=jnp.float32)
    h1 = jnp.maximum(h1 + b1_ref[...], 0.0)
    # fc2 + ReLU: feed the MXU in the weights' (possibly bf16) dtype.
    h2 = jnp.dot(h1.astype(w2_ref.dtype), w2_ref[...],
                 preferred_element_type=jnp.float32)
    h2 = jnp.maximum(h2 + b2_ref[...], 0.0)
    # outfc: compute on the lane-padded width, but only store the real classes
    # (static slice; a no-op when n_out is already a 128-multiple).
    y = jnp.dot(h2.astype(w3_ref.dtype), w3_ref[...],
                preferred_element_type=jnp.float32)
    y = y + b3_ref[...]
    o_ref[...] = y[:, :n_out].astype(o_ref.dtype)


def _pick_batch_tile(H, H2p, H4p, n_pad, n_out, x_bytes, w_bytes,
                     budget_bytes, mxu_rows, x_buffers):
    """Largest batch tile whose working set fits the chip-aware VMEM budget."""
    weights = ((H * H2p + H2p * H4p + H4p * n_pad) * w_bytes
               + (H2p + H4p + n_pad) * 4)                # single-buffered
    per_row = (x_buffers * H * x_bytes                   # x tile buffers
               + 2 * n_out * x_bytes                     # out tile (2 buffers)
               + (H2p + H4p + n_pad) * 4                 # f32 intermediates
               + (H2p + H4p) * w_bytes)                  # bf16 recast temps
    avail = max(budget_bytes - weights, per_row * 8)
    tb = max(8, min(avail // per_row, 1024))
    if tb >= 2 * mxu_rows:
        tb = (tb // mxu_rows) * mxu_rows   # full-height MXU passes
    elif tb >= 128:
        tb = (tb // 128) * 128
    else:
        tb = (tb // 8) * 8
    return int(tb)


def prepare_params(w1, b1, w2, b2, w3, b3):
    """One-time parameter prep: zero-pad hidden widths and the class dim up to
    128-lane multiples so every intermediate is lane-dense. Exact: padded
    weight rows/cols and biases are zero, so ReLU(0)=0 and padded outputs are
    sliced off in-kernel."""
    H2 = w1.shape[1]
    H4 = w2.shape[1]
    n_classes = w3.shape[1]
    H2p = _round_up(max(H2, 128), 128)
    H4p = _round_up(max(H4, 128), 128)
    n_pad = _round_up(max(n_classes, 128), 128)
    w1p = jnp.pad(w1, ((0, 0), (0, H2p - H2)))
    b1p = jnp.pad(b1, ((0, 0), (0, H2p - H2)))
    w2p = jnp.pad(w2, ((0, H2p - H2), (0, H4p - H4)))
    b2p = jnp.pad(b2, ((0, 0), (0, H4p - H4)))
    w3p = jnp.pad(w3, ((0, H4p - H4), (0, n_pad - n_classes)))
    b3p = jnp.pad(b3, ((0, 0), (0, n_pad - n_classes)))
    return (w1p, b1p, w2p, b2p, w3p, b3p), n_classes


@functools.partial(jax.jit,
                   static_argnames=("n_classes", "block_b", "x_buffers"))
def classification_head(x, w1, b1, w2, b2, w3, b3, *, n_classes,
                        block_b=None, x_buffers=2):
    """Fused 3-layer MLP head. Takes prepare_params() outputs.
    x: (B, n_hidden). Returns (B, n_classes)."""
    B, H = x.shape
    H2p, H4p = w1.shape[1], w2.shape[1]
    n_pad = w3.shape[1]
    n_out = int(n_classes)

    vmem_cap, num_tc, mxu_rows = _chip_info()
    x_bytes = x.dtype.itemsize
    w_bytes = w1.dtype.itemsize

    if block_b is None:
        budget = int(0.75 * vmem_cap)
        block_b = _pick_batch_tile(H, H2p, H4p, n_pad, n_out, x_bytes,
                                   w_bytes, budget, mxu_rows, x_buffers)
    tb = min(block_b, B)
    if num_tc > 1 and B >= 256:
        # 2-TC chips (v7x): force >=2 grid steps and prefer an even step count
        # so dimension_semantics=("parallel",) splits the batch evenly.
        tb = min(tb, _round_up(pl.cdiv(B, 2), 128))
        while tb > 128 and pl.cdiv(B, tb) % 2 != 0:
            tb -= 128
    grid = (pl.cdiv(B, tb),)

    # Weights / biases: constant index_map => VMEM-resident; single-buffered.
    def resident(a):
        return pl.BlockSpec(a.shape, lambda i: (0, 0),
                            pipeline_mode=pl.Buffered(1))

    x_spec = (pl.BlockSpec((tb, H), lambda i: (i, 0)) if x_buffers == 2 else
              pl.BlockSpec((tb, H), lambda i: (i, 0),
                           pipeline_mode=pl.Buffered(x_buffers)))

    param_bytes = sum(p.size * p.dtype.itemsize
                      for p in (w1, b1, w2, b2, w3, b3))
    est_vmem = (param_bytes
                + x_buffers * tb * H * x_bytes       # x tile buffers
                + 2 * tb * n_out * x_bytes           # out tile, double-buffered
                + tb * (H2p + H4p + n_pad) * 4       # f32 intermediates
                + tb * (H2p + H4p) * w_bytes)        # bf16 recast temporaries
    # Never ask Mosaic for more than ~87.5% of physical VMEM (v7x: 64 MiB).
    hard_cap = max(int(0.875 * vmem_cap), 32 << 20)
    vmem_limit = int(min(max(est_vmem + (8 << 20), 32 << 20), hard_cap))

    cost = pl.CostEstimate(
        flops=2 * B * (H * H2p + H2p * H4p + H4p * n_pad),
        transcendentals=0,
        bytes_accessed=int(x.size * x_bytes + param_bytes
                           + B * n_out * x_bytes),
    )

    kernel = functools.partial(_mlp_head_kernel, n_out=n_out)

    return pl.pallas_call(
        kernel,
        out_shape=jax.ShapeDtypeStruct((B, n_out), x.dtype),
        grid_spec=pltpu.PrefetchScalarGridSpec(
            num_scalar_prefetch=0,
            grid=grid,
            in_specs=[
                x_spec,
                resident(w1), resident(b1),
                resident(w2), resident(b2),
                resident(w3), resident(b3),
            ],
            out_specs=pl.BlockSpec((tb, n_out), lambda i: (i, 0)),
        ),
        compiler_params=pltpu.CompilerParams(
            dimension_semantics=("parallel",),
            vmem_limit_bytes=vmem_limit),
        cost_estimate=cost,
    )(x, w1, b1, w2, b2, w3, b3)


def init_params(key, n_hidden, n_classes, dtype=jnp.float32):
    """nn.Linear-style init (uniform +/- 1/sqrt(fan_in)). Weights returned as
    (in_features, out_features) in `dtype`; biases as (1, out) in f32."""
    dims = [(n_hidden, n_hidden // 2),
            (n_hidden // 2, n_hidden // 4),
            (n_hidden // 4, n_classes)]
    params = []
    for fan_in, fan_out in dims:
        key, kw, kb = jax.random.split(key, 3)
        bound = 1.0 / (fan_in ** 0.5)
        w = jax.random.uniform(kw, (fan_in, fan_out), jnp.float32, -bound, bound)
        b = jax.random.uniform(kb, (1, fan_out), jnp.float32, -bound, bound)
        params.extend([w.astype(dtype), b])
    return tuple(params)


def _reference(x, w1, b1, w2, b2, w3, b3):
    h1 = jnp.maximum(x @ w1 + b1, 0.0)
    h2 = jnp.maximum(h1 @ w2 + b2, 0.0)
    return h2 @ w3 + b3


if __name__ == "__main__":
    n_hidden, n_classes, batch = 128, 10, 64

    key = jax.random.PRNGKey(0)
    key, kx = jax.random.split(key)
    x = jax.random.normal(kx, (batch, n_hidden), jnp.float32)
    raw_params = init_params(key, n_hidden, n_classes)
    y_ref = _reference(x, *raw_params)

    # One-time param prep (lane padding) -- done once, outside the hot path.
    params, n_out = prepare_params(*raw_params)

    # f32 path: exact match vs. reference.
    y = classification_head(x, *params, n_classes=n_out)
    jax.block_until_ready(y)
    assert y.shape == (batch, n_classes)
    assert jnp.allclose(y, y_ref, atol=1e-5, rtol=1e-5), "f32 mismatch vs reference"

    # bf16 weights/activations (f32 accumulation in-kernel): native-rate MXU path.
    w1p, b1p, w2p, b2p, w3p, b3p = params
    y_bf16 = classification_head(
        x.astype(jnp.bfloat16),
        w1p.astype(jnp.bfloat16), b1p,
        w2p.astype(jnp.bfloat16), b2p,
        w3p.astype(jnp.bfloat16), b3p,
        n_classes=n_out)
    jax.block_until_ready(y_bf16)
    assert y_bf16.shape == (batch, n_classes)
    assert jnp.allclose(y_bf16.astype(jnp.float32), y_ref, atol=0.1, rtol=0.1), \
        "bf16 mismatch vs reference"

    # TODO(synk): optional int8 (v5e/v6e) / fp8 (v7x) weight quantization path.
    print("KERNEL_OK")
</pallas_src>

<mosaic_0001>
module attributes {stable_mosaic.version = 11 : i64} {
  func.func @_mlp_head_kernel(%arg0: i32, %arg1: memref<64x128xf32, #tpu.memory_space<vmem>>, %arg2: memref<128x128xf32, #tpu.memory_space<vmem>>, %arg3: memref<1x128xf32, #tpu.memory_space<vmem>>, %arg4: memref<128x128xf32, #tpu.memory_space<vmem>>, %arg5: memref<1x128xf32, #tpu.memory_space<vmem>>, %arg6: memref<128x128xf32, #tpu.memory_space<vmem>>, %arg7: memref<1x128xf32, #tpu.memory_space<vmem>>, %arg8: memref<64x10xf32, #tpu.memory_space<vmem>>) attributes {dimension_semantics = [#tpu.dimension_semantics<parallel>], iteration_bounds = array<i64: 1>, scalar_prefetch = 0 : i64, scratch_operands = 0 : i64, tpu.core_type = #tpu.core_type<tc>, window_params = [{transform_indices = @transform_0, window_bounds = array<i64: 64, 128>}, {pipeline_mode = #tpu.pipeline_mode<synchronous>, transform_indices = @transform_1, window_bounds = array<i64: 128, 128>}, {pipeline_mode = #tpu.pipeline_mode<synchronous>, transform_indices = @transform_2, window_bounds = array<i64: 1, 128>}, {pipeline_mode = #tpu.pipeline_mode<synchronous>, transform_indices = @transform_3, window_bounds = array<i64: 128, 128>}, {pipeline_mode = #tpu.pipeline_mode<synchronous>, transform_indices = @transform_4, window_bounds = array<i64: 1, 128>}, {pipeline_mode = #tpu.pipeline_mode<synchronous>, transform_indices = @transform_5, window_bounds = array<i64: 128, 128>}, {pipeline_mode = #tpu.pipeline_mode<synchronous>, transform_indices = @transform_6, window_bounds = array<i64: 1, 128>}, {transform_indices = @transform_7, window_bounds = array<i64: 64, 10>}]} {
    %c0 = arith.constant 0 : index
    %c0_0 = arith.constant 0 : index
    %0 = vector.load %arg1[%c0, %c0_0] : memref<64x128xf32, #tpu.memory_space<vmem>>, vector<64x128xf32>
    %c0_1 = arith.constant 0 : index
    %c0_2 = arith.constant 0 : index
    %1 = vector.load %arg2[%c0_1, %c0_2] : memref<128x128xf32, #tpu.memory_space<vmem>>, vector<128x128xf32>
    %cst = arith.constant dense<0.000000e+00> : vector<64x128xf32>
    %2 = tpu.matmul %0, %1, %cst {dimension_numbers = #tpu.dot_dimension_numbers<[1], [0], [0], [1], [0, 0, 1, 1], [], []>} : vector<64x128xf32>, vector<128x128xf32>, vector<64x128xf32> -> vector<64x128xf32>
    %c0_3 = arith.constant 0 : index
    %c0_4 = arith.constant 0 : index
    %3 = vector.load %arg3[%c0_3, %c0_4] : memref<1x128xf32, #tpu.memory_space<vmem>>, vector<1x128xf32>
    %4 = vector.broadcast %3 : vector<1x128xf32> to vector<64x128xf32>
    %5 = arith.addf %2, %4 : vector<64x128xf32>
    %cst_5 = arith.constant 0.000000e+00 : f32
    %6 = vector.broadcast %cst_5 : f32 to vector<64x128xf32>
    %7 = arith.maximumf %5, %6 : vector<64x128xf32>
    %c0_6 = arith.constant 0 : index
    %c0_7 = arith.constant 0 : index
    %8 = vector.load %arg4[%c0_6, %c0_7] : memref<128x128xf32, #tpu.memory_space<vmem>>, vector<128x128xf32>
    %cst_8 = arith.constant dense<0.000000e+00> : vector<64x128xf32>
    %9 = tpu.matmul %7, %8, %cst_8 {dimension_numbers = #tpu.dot_dimension_numbers<[1], [0], [0], [1], [0, 0, 1, 1], [], []>} : vector<64x128xf32>, vector<128x128xf32>, vector<64x128xf32> -> vector<64x128xf32>
    %c0_9 = arith.constant 0 : index
    %c0_10 = arith.constant 0 : index
    %10 = vector.load %arg5[%c0_9, %c0_10] : memref<1x128xf32, #tpu.memory_space<vmem>>, vector<1x128xf32>
    %11 = vector.broadcast %10 : vector<1x128xf32> to vector<64x128xf32>
    %12 = arith.addf %9, %11 : vector<64x128xf32>
    %cst_11 = arith.constant 0.000000e+00 : f32
    %13 = vector.broadcast %cst_11 : f32 to vector<64x128xf32>
    %14 = arith.maximumf %12, %13 : vector<64x128xf32>
    %c0_12 = arith.constant 0 : index
    %c0_13 = arith.constant 0 : index
    %15 = vector.load %arg6[%c0_12, %c0_13] : memref<128x128xf32, #tpu.memory_space<vmem>>, vector<128x128xf32>
    %cst_14 = arith.constant dense<0.000000e+00> : vector<64x128xf32>
    %16 = tpu.matmul %14, %15, %cst_14 {dimension_numbers = #tpu.dot_dimension_numbers<[1], [0], [0], [1], [0, 0, 1, 1], [], []>} : vector<64x128xf32>, vector<128x128xf32>, vector<64x128xf32> -> vector<64x128xf32>
    %c0_15 = arith.constant 0 : index
    %c0_16 = arith.constant 0 : index
    %17 = vector.load %arg7[%c0_15, %c0_16] : memref<1x128xf32, #tpu.memory_space<vmem>>, vector<1x128xf32>
    %18 = vector.broadcast %17 : vector<1x128xf32> to vector<64x128xf32>
    %19 = arith.addf %16, %18 : vector<64x128xf32>
    %20 = vector.extract_strided_slice %19 {offsets = [0, 0], sizes = [64, 10], strides = [1, 1]} : vector<64x128xf32> to vector<64x10xf32>
    %c0_17 = arith.constant 0 : index
    %c0_18 = arith.constant 0 : index
    %21 = vector.load %arg8[%c0_17, %c0_18] : memref<64x10xf32, #tpu.memory_space<vmem>>, vector<64x10xf32>
    tpu.vector_store %arg8[%c0_17, %c0_18], %20 {strides = array<i32>} : memref<64x10xf32, #tpu.memory_space<vmem>>, vector<64x10xf32>,
    return
  }
  func.func @transform_0(%arg0: i32) -> (i32, i32) {
    %c0_i32 = arith.constant 0 : i32
    %c0_i32_0 = arith.constant 0 : i32
    return %arg0, %c0_i32 : i32, i32
  }
  func.func @transform_1(%arg0: i32) -> (i32, i32) {
    %c0_i32 = arith.constant 0 : i32
    %c0_i32_0 = arith.constant 0 : i32
    %c0_i32_1 = arith.constant 0 : i32
    return %c0_i32, %c0_i32_0 : i32, i32
  }
  func.func @transform_2(%arg0: i32) -> (i32, i32) {
    %c0_i32 = arith.constant 0 : i32
    %c0_i32_0 = arith.constant 0 : i32
    %c0_i32_1 = arith.constant 0 : i32
    return %c0_i32, %c0_i32_0 : i32, i32
  }
  func.func @transform_3(%arg0: i32) -> (i32, i32) {
    %c0_i32 = arith.constant 0 : i32
    %c0_i32_0 = arith.constant 0 : i32
    %c0_i32_1 = arith.constant 0 : i32
    return %c0_i32, %c0_i32_0 : i32, i32
  }
  func.func @transform_4(%arg0: i32) -> (i32, i32) {
    %c0_i32 = arith.constant 0 : i32
    %c0_i32_0 = arith.constant 0 : i32
    %c0_i32_1 = arith.constant 0 : i32
    return %c0_i32, %c0_i32_0 : i32, i32
  }
  func.func @transform_5(%arg0: i32) -> (i32, i32) {
    %c0_i32 = arith.constant 0 : i32
    %c0_i32_0 = arith.constant 0 : i32
    %c0_i32_1 = arith.constant 0 : i32
    return %c0_i32, %c0_i32_0 : i32, i32
  }
  func.func @transform_6(%arg0: i32) -> (i32, i32) {
    %c0_i32 = arith.constant 0 : i32
    %c0_i32_0 = arith.constant 0 : i32
    %c0_i32_1 = arith.constant 0 : i32
    return %c0_i32, %c0_i32_0 : i32, i32
  }
  func.func @transform_7(%arg0: i32) -> (i32, i32) {
    %c0_i32 = arith.constant 0 : i32
    %c0_i32_0 = arith.constant 0 : i32
    return %arg0, %c0_i32 : i32, i32
  }
}

</mosaic_0001>

<bundles_post_ra>
// kernel: classification_head.1
= control target key start
LH: loop header
LB: loop body
LE: loop exit
PB: predicated region body
PF: predicated region fallthrough
CT: control target
= control target key end

     0   :  { %12 = vsyncpa [#allocation3], 0  ;;  %s1085_s0 = inlined_call_operand.hbm [shape: f32[64,128], index: 0, kind: input, shape index: {}]   ;;  %s1086_s1 = inlined_call_operand.hbm [shape: f32[128,128], index: 1, kind: input, shape index: {}]   ;;  %s1087_s2 = inlined_call_operand.vmem [shape: f32[1,128], index: 2, kind: input, shape index: {}]   ;;  %s1088_s3 = inlined_call_operand.hbm [shape: f32[128,128], index: 3, kind: input, shape index: {}]   ;;  %s1089_s4 = inlined_call_operand.vmem [shape: f32[1,128], index: 4, kind: input, shape index: {}]   ;;  %s1090_s5 = inlined_call_operand.hbm [shape: f32[128,128], index: 5, kind: input, shape index: {}]   ;;  %s1091_s6 = inlined_call_operand.vmem [shape: f32[1,128], index: 6, kind: input, shape index: {}]   ;;  %s1092_s7 = inlined_call_operand.vmem [shape: f32[64,10], index: 7, kind: output, shape index: {}]  }
   0x1   :  { %13 = vsyncpa [#allocation5], 0 }
   0x2   :  { %14 = vsyncpa [#allocation8], 0  ;;  %s924_s24 = smov [#allocation4]   ;;  %s925_s26 = smov [#allocation2]  }
   0x3   :  { %s32_s25 = sshll.u32 %s924_s24, 4  ;;  %s20_s27 = sshll.u32 %s925_s26, 4  ;;  %s33_s25 = int_to_ptr.vmem [resolvable:$true] %s32_s25  ;;  %s970_s27 = int_to_ptr.vmem [resolvable:$true] %s20_s27 }
   0x4   :  { %s830_s30 = scalar_lea.hbm %s1086_s1, 2048 }
   0x5   :  { %p831_p0 = scmp.ne.s32.totalorder %s1086_s1, %s830_s30  ;;  %p834_p1 = scmp.lt.u32.totalorder %s830_s30, %s1086_s1 }
   0x7   :  { %p836_p2 = pnand %p834_p1, %p831_p0 }
   0x9   :  { %839 = shalt.err (!%p836_p2)
}
   0xa   :  { %s840_s12 = scalar_lea.vmem %s33_s25, 2048  ;;  %p845_p4 = scmp.lt.s32.totalorder %s33_s25, %s33_s25 }
   0xb   :  { %p841_p3 = scmp.ne.s32.totalorder %s33_s25, %s840_s12  ;;  %p846_p5 = scmp.lt.s32.totalorder %s840_s12, %s840_s12 }
   0xd   :  { %p847_p6 = por %p846_p5, %p845_p4 }
   0xf   :  { %p848_p7 = pnand %p847_p6, %p841_p3 }
  0x11   :  { %851 = shalt.err (!%p848_p7)
}
  0x12   :  { %s926_s13 = smov 128   ;;  %s927_s14 = smov 8  }
  0x13   :  { %38 = dma.hbm_to_vmem [thread:$0]  %s1086_s1, 2048, %s33_s25, [#allocation5], %s926_s13, %s926_s13, %s927_s14  }
  0x14   :  { %s852_s19 = scalar_lea.hbm %s1085_s0, 1024 }
  0x15   :  { %p853_p8 = scmp.ne.s32.totalorder %s1085_s0, %s852_s19  ;;  %p856_p9 = scmp.lt.u32.totalorder %s852_s19, %s1085_s0 }
  0x17   :  { %p858_p10 = pnand %p856_p9, %p853_p8 }
  0x19   :  { %861 = shalt.err (!%p858_p10)
}
  0x1a   :  { %s862_s24 = scalar_lea.vmem %s970_s27, 1024  ;;  %p867_p12 = scmp.lt.s32.totalorder %s970_s27, %s970_s27 }
  0x1b   :  { %p863_p11 = scmp.ne.s32.totalorder %s970_s27, %s862_s24  ;;  %p868_p13 = scmp.lt.s32.totalorder %s862_s24, %s862_s24 }
  0x1d   :  { %p869_p0 = por %p868_p13, %p867_p12 }
  0x1f   :  { %p870_p1 = pnand %p869_p0, %p863_p11 }
  0x21   :  { %873 = shalt.err (!%p870_p1)
}
  0x22   :  { %26 = dma.hbm_to_vmem [thread:$0]  %s1085_s0, 1024, %s970_s27, [#allocation3], %s926_s13, %s926_s13, %s927_s14  }
  0x23   :  { %s928_s26 = smov [#allocation6]   ;;  %s929_s29 = smov [#allocation7]  }
  0x24   :  { %s46_s28 = sshll.u32 %s928_s26, 4  ;;  %s60_s30 = sshll.u32 %s929_s29, 4  ;;  %s47_s28 = int_to_ptr.vmem [resolvable:$true] %s46_s28  ;;  %s1007_s30 = int_to_ptr.vmem [resolvable:$true] %s60_s30 }
  0x25   :  { %s874_s10 = scalar_lea.hbm %s1088_s3, 2048 }
  0x26   :  { %p875_p2 = scmp.ne.s32.totalorder %s1088_s3, %s874_s10  ;;  %p878_p3 = scmp.lt.u32.totalorder %s874_s10, %s1088_s3 }
  0x28   :  { %p880_p4 = pnand %p878_p3, %p875_p2 }
  0x2a   :  { %883 = shalt.err (!%p880_p4)
}
  0x2b   :  { %s884_s0 = scalar_lea.vmem %s47_s28, 2048  ;;  %p889_p6 = scmp.lt.s32.totalorder %s47_s28, %s47_s28 }
  0x2c   :  { %p885_p5 = scmp.ne.s32.totalorder %s47_s28, %s884_s0  ;;  %p890_p7 = scmp.lt.s32.totalorder %s884_s0, %s884_s0 }
  0x2e   :  { %p891_p8 = por %p890_p7, %p889_p6 }
  0x30   :  { %p892_p9 = pnand %p891_p8, %p885_p5 }
  0x32   :  { %895 = shalt.err (!%p892_p9)
}
  0x33   :  { %52 = dma.hbm_to_vmem [thread:$0]  %s1088_s3, 2048, %s47_s28, [#allocation5], %s926_s13, %s926_s13, %s927_s14  }
  0x34   :  { %s896_s20 = scalar_lea.hbm %s1090_s5, 2048 }
  0x35   :  { %p897_p10 = scmp.ne.s32.totalorder %s1090_s5, %s896_s20  ;;  %p900_p11 = scmp.lt.u32.totalorder %s896_s20, %s1090_s5 }
  0x37   :  { %p902_p12 = pnand %p900_p11, %p897_p10 }
  0x39   :  { %905 = shalt.err (!%p902_p12)
}
  0x3a   :  { %s906_s1 = scalar_lea.vmem %s1007_s30, 2048  ;;  %p911_p0 = scmp.lt.s32.totalorder %s1007_s30, %s1007_s30 }
  0x3b   :  { %p907_p13 = scmp.ne.s32.totalorder %s1007_s30, %s906_s1  ;;  %p912_p1 = scmp.lt.s32.totalorder %s906_s1, %s906_s1 }
  0x3d   :  { %p913_p2 = por %p912_p1, %p911_p0 }
  0x3f   :  { %p914_p3 = pnand %p913_p2, %p907_p13 }
  0x41   :  { %917 = shalt.err (!%p914_p3)
}
  0x42   :  { %66 = dma.hbm_to_vmem [thread:$0]  %s1090_s5, 2048, %s1007_s30, [#allocation8], %s926_s13, %s926_s13, %s927_s14  }
  0x43   :  { %918 = dma.done.wait [#allocation3], 1024  }
  0x44   :  { %919 = vsyncadd [#allocation3], 4294966272 }
  0x45   :  { %920 = dma.done.wait [#allocation5], 4096  }
  0x46   :  { %921 = vsyncadd [#allocation5], 4294963200 }
  0x47   :  { %922 = dma.done.wait [#allocation8], 2048  }
  0x48   :  { %923 = vsyncadd [#allocation8], 4294965248  ;;  %v89_v0 = vld [vmem:[#allocation4] sm:$0xff]  ;;  %v90_v1 = vld [vmem:[#allocation4 + $0x8] sm:$0xff]  ;;  %vm489_vm0 = vcmask 80896  }
  0x49   :  { %v91_v2 = vld [vmem:[#allocation4 + $0x10] sm:$0xff]  ;;  %v712_v3 = vpack.c.bf16 %v90_v1, %v89_v0  ;;  %v92_v4 = vld [vmem:[#allocation4 + $0x18] sm:$0xff]  ;;  %v93_v6 = vld [vmem:[#allocation4 + $0x20] sm:$0xff] }
  0x4a   :  { %v716_v5 = vpack.c.bf16 %v92_v4, %v91_v2  ;;  %v94_v7 = vld [vmem:[#allocation4 + $0x28] sm:$0xff]  ;;  %v81_v9 = vld [vmem:[#allocation2] sm:$0xff]  ;;  %v95_v10 = vld [vmem:[#allocation4 + $0x30] sm:$0xff] }
  0x4b   :  { %713 = vmatprep.subr.bf16.mxu0 %v712_v3  ;;  %v720_v8 = vpack.c.bf16 %v94_v7, %v93_v6  ;;  %v96_v11 = vld [vmem:[#allocation4 + $0x38] sm:$0xff]  ;;  %612 = vmatprep.mubr.f32.mxu0 %v81_v9  ;;  %v225_v12 = vld [vmem:[#allocation6] sm:$0xff]  ;;  %v226_v13 = vld [vmem:[#allocation6 + $0x8] sm:$0xff] }
  0x4c   :  { %715 = vmatpush3.bf16.msra.mxu0 %v712_v3  ;;  %v227_v14 = vld [vmem:[#allocation6 + $0x10] sm:$0xff]  ;;  %v724_v15 = vpack.c.bf16 %v96_v11, %v95_v10  ;;  %v97_v16 = vld [vmem:[#allocation4 + $0x40] sm:$0xff]  ;;  %v744_v17 = vpack.c.bf16 %v226_v13, %v225_v12  ;;  %v228_v18 = vld [vmem:[#allocation6 + $0x18] sm:$0xff] }
  0x4d   :  { %717 = vmatprep.subr.bf16.mxu0 %v716_v5  ;;  %v98_v19 = vld [vmem:[#allocation4 + $0x48] sm:$0xff]  ;;  %v748_v20 = vpack.c.bf16 %v228_v18, %v227_v14  ;;  %v229_v21 = vld [vmem:[#allocation6 + $0x20] sm:$0xff]  ;;  %v99_v24 = vld [vmem:[#allocation4 + $0x50] sm:$0xff] }
  0x4e   :  { %v230_v22 = vld [vmem:[#allocation6 + $0x28] sm:$0xff]  ;;  %745 = vmatprep.subr.bf16.mxu1 %v744_v17  ;;  %v728_v23 = vpack.c.bf16 %v98_v19, %v97_v16  ;;  %v100_v26 = vld [vmem:[#allocation4 + $0x58] sm:$0xff]  ;;  %v231_v27 = vld [vmem:[#allocation6 + $0x30] sm:$0xff] }
  0x4f   :  { %747 = vmatpush3.bf16.msra.mxu1 %v744_v17  ;;  %v752_v25 = vpack.c.bf16 %v230_v22, %v229_v21  ;;  %v232_v28 = vld [vmem:[#allocation6 + $0x38] sm:$0xff]  ;;  %v732_v29 = vpack.c.bf16 %v100_v26, %v99_v24  ;;  %v101_v30 = vld [vmem:[#allocation4 + $0x60] sm:$0xff]  ;;  %v102_v32 = vld [vmem:[#allocation4 + $0x68] sm:$0xff] }
  0x50   :  { %719 = vmatpush3.bf16.msra.mxu0 %v716_v5  ;;  %749 = vmatprep.subr.bf16.mxu1 %v748_v20  ;;  %v756_v31 = vpack.c.bf16 %v232_v28, %v231_v27  ;;  %v233_v33 = vld [vmem:[#allocation6 + $0x40] sm:$0xff]  ;;  %v234_v34 = vld [vmem:[#allocation6 + $0x48] sm:$0xff]  ;;  %v736_v35 = vpack.c.bf16 %v102_v32, %v101_v30  ;;  %v103_v36 = vld [vmem:[#allocation4 + $0x70] sm:$0xff] }
  0x51   :  { %721 = vmatprep.subr.bf16.mxu0 %v720_v8  ;;  %v760_v37 = vpack.c.bf16 %v234_v34, %v233_v33  ;;  %v104_v38 = vld [vmem:[#allocation4 + $0x78] sm:$0xff]  ;;  %v235_v39 = vld [vmem:[#allocation6 + $0x50] sm:$0xff]  ;;  %v237_v43 = vld [vmem:[#allocation6 + $0x60] sm:$0xff] }
  0x52   :  { %v236_v40 = vld [vmem:[#allocation6 + $0x58] sm:$0xff]  ;;  %v740_v41 = vpack.c.bf16 %v104_v38, %v103_v36  ;;  %v238_v44 = vld [vmem:[#allocation6 + $0x68] sm:$0xff]  ;;  %v83_v47 = vld [vmem:[#allocation2 + $0x10] sm:$0xff] }
  0x53   :  { %751 = vmatpush3.bf16.msra.mxu1 %v748_v20  ;;  %v764_v42 = vpack.c.bf16 %v236_v40, %v235_v39  ;;  %v768_v45 = vpack.c.bf16 %v238_v44, %v237_v43  ;;  %v82_v46 = vld [vmem:[#allocation2 + $0x8] sm:$0xff]  ;;  %v84_v48 = vld [vmem:[#allocation2 + $0x18] sm:$0xff]  ;;  %v85_v49 = vld [vmem:[#allocation2 + $0x20] sm:$0xff] }
  0x54   :  { %723 = vmatpush3.bf16.msra.mxu0 %v720_v8  ;;  %753 = vmatprep.subr.bf16.mxu1 %v752_v25  ;;  %v86_v50 = vld [vmem:[#allocation2 + $0x28] sm:$0xff]  ;;  %v87_v51 = vld [vmem:[#allocation2 + $0x30] sm:$0xff]  ;;  %v88_v52 = vld [vmem:[#allocation2 + $0x38] sm:$0xff] }
  0x55   :  { %725 = vmatprep.subr.bf16.mxu0 %v724_v15  ;;  %v239_v53 = vld [vmem:[#allocation6 + $0x70] sm:$0xff]  ;;  %v240_v54 = vld [vmem:[#allocation6 + $0x78] sm:$0xff]  ;;  %v361_v56 = vld [vmem:[#allocation7] sm:$0xff] }
  0x56   :  { %v772_v55 = vpack.c.bf16 %v240_v54, %v239_v53  ;;  %v362_v57 = vld [vmem:[#allocation7 + $0x8] sm:$0xff]  ;;  %v363_v58 = vld [vmem:[#allocation7 + $0x10] sm:$0xff]  ;;  %v364_v60 = vld [vmem:[#allocation7 + $0x18] sm:$0xff] }
  0x57   :  { %755 = vmatpush3.bf16.msra.mxu1 %v752_v25  ;;  %v776_v59 = vpack.c.bf16 %v362_v57, %v361_v56  ;;  %v780_v61 = vpack.c.bf16 %v364_v60, %v363_v58  ;;  %v365_v62 = vld [vmem:[#allocation7 + $0x20] sm:$0xff]  ;;  %v366_v63 = vld [vmem:[#allocation7 + $0x28] sm:$0xff]  ;;  %v367_v1 = vld [vmem:[#allocation7 + $0x30] sm:$0xff] }
  0x58   :  { %727 = vmatpush3.bf16.msra.mxu0 %v724_v15  ;;  %757 = vmatprep.subr.bf16.mxu1 %v756_v31  ;;  %v784_v0 = vpack.c.bf16 %v366_v63, %v365_v62  ;;  %v368_v2 = vld [vmem:[#allocation7 + $0x38] sm:$0xff]  ;;  %v369_v4 = vld [vmem:[#allocation7 + $0x40] sm:$0xff]  ;;  %v370_v5 = vld [vmem:[#allocation7 + $0x48] sm:$0xff] }
  0x59   :  { %729 = vmatprep.subr.bf16.mxu0 %v728_v23  ;;  %v788_v3 = vpack.c.bf16 %v368_v2, %v367_v1  ;;  %v792_v6 = vpack.c.bf16 %v370_v5, %v369_v4  ;;  %v371_v7 = vld [vmem:[#allocation7 + $0x50] sm:$0xff]  ;;  %v372_v8 = vld [vmem:[#allocation7 + $0x58] sm:$0xff]  ;;  %v373_v10 = vld [vmem:[#allocation7 + $0x60] sm:$0xff] }
  0x5a   :  { %v796_v9 = vpack.c.bf16 %v372_v8, %v371_v7  ;;  %v374_v11 = vld [vmem:[#allocation7 + $0x68] sm:$0xff]  ;;  %v505_v13 = vld [vmem:[%s1087_s2] ss:$0 sm:$0xff]  ;;  %v375_v38 = vld [vmem:[#allocation7 + $0x70] sm:$0xff] }
  0x5b   :  { %759 = vmatpush3.bf16.msra.mxu1 %v756_v31  ;;  %v800_v12 = vpack.c.bf16 %v374_v11, %v373_v10  ;;  %v376_v39 = vld [vmem:[#allocation7 + $0x78] sm:$0xff]  ;;  %v507_v2 = vld [vmem:[%s1091_s6] ss:$0 sm:$0xff] }
  0x5c   :  { %731 = vmatpush3.bf16.msra.mxu0 %v728_v23  ;;  %761 = vmatprep.subr.bf16.mxu1 %v760_v37  ;;  %v804_v40 = vpack.c.bf16 %v376_v39, %v375_v38 }
  0x5d   :  { %733 = vmatprep.subr.bf16.mxu0 %v732_v29 }
  0x5f   :  { %763 = vmatpush3.bf16.msra.mxu1 %v760_v37 }
  0x60   :  { %735 = vmatpush3.bf16.msra.mxu0 %v732_v29  ;;  %765 = vmatprep.subr.bf16.mxu1 %v764_v42 }
  0x61   :  { %737 = vmatprep.subr.bf16.mxu0 %v736_v35 }
  0x63   :  { %767 = vmatpush3.bf16.msra.mxu1 %v764_v42 }
  0x64   :  { %739 = vmatpush3.bf16.msra.mxu0 %v736_v35  ;;  %769 = vmatprep.subr.bf16.mxu1 %v768_v45 }
  0x65   :  { %741 = vmatprep.subr.bf16.mxu0 %v740_v41 }
  0x67   :  { %771 = vmatpush3.bf16.msra.mxu1 %v768_v45 }
  0x68   :  { %743 = vmatpush3.bf16.msra.mxu0 %v740_v41  ;;  %773 = vmatprep.subr.bf16.mxu1 %v772_v55  ;;  %v506_v41 = vld [vmem:[%s1089_s4] ss:$0 sm:$0xff] }
  0x69   :  { %777 = vmatprep.subr.bf16.mxu0 %v776_v59 }
  0x6b   :  { %613 = vmatmul.mubr.f32.vlgmr.msra.gmra.mrb[0].mxu0 %v82_v46  ;;  %775 = vmatpush3.bf16.msra.mxu1 %v772_v55 }
  0x6c   :  { %615 = vmatprep.mubr.f32.mxu0 %v83_v47  ;;  %808 = vmatprep.subr.bf16.mxu1 %v776_v59 }
  0x6d   :  { %779 = vmatpush3.bf16.msra.mxu0 %v776_v59 }
  0x6e   :  { %781 = vmatprep.subr.bf16.mxu0 %v780_v61 }
  0x6f   :  { %616 = vmatmul.mubr.f32.gmra.mrb[2].mxu0 %v84_v48 }
  0x70   :  { %618 = vmatprep.mubr.f32.mxu0 %v85_v49 }
  0x71   :  { %783 = vmatpush3.bf16.msra.mxu0 %v780_v61 }
  0x72   :  { %785 = vmatprep.subr.bf16.mxu0 %v784_v0 }
  0x73   :  { %619 = vmatmul.mubr.f32.gmra.mrb[4].mxu0 %v86_v50 }
  0x74   :  { %621 = vmatprep.mubr.f32.mxu0 %v87_v51 }
  0x75   :  { %787 = vmatpush3.bf16.msra.mxu0 %v784_v0 }
  0x76   :  { %789 = vmatprep.subr.bf16.mxu0 %v788_v3 }
  0x77   :  { %622 = vmatmul.mubr.f32.gmra.mrb[6].mxu0 %v88_v52 }
  0x79   :  { %791 = vmatpush3.bf16.msra.mxu0 %v788_v3 }
  0x7a   :  { %793 = vmatprep.subr.bf16.mxu0 %v792_v6 }
  0x7d   :  { %795 = vmatpush3.bf16.msra.mxu0 %v792_v6 }
  0x7e   :  { %797 = vmatprep.subr.bf16.mxu0 %v796_v9 }
  0x81   :  { %799 = vmatpush3.bf16.msra.mxu0 %v796_v9 }
  0x82   :  { %801 = vmatprep.subr.bf16.mxu0 %v800_v12 }
  0x85   :  { %803 = vmatpush3.bf16.msra.mxu0 %v800_v12 }
  0x86   :  { %805 = vmatprep.subr.bf16.mxu0 %v804_v40 }
  0x89   :  { %807 = vmatpush3.bf16.msra.mxu0 %v804_v40 }
 0x13e   :  { %v614_v14 = vpop.f32.mrb[0].mxu0 }
 0x13f   :  { %v184_v15 = vadd.f32 %v614_v14, %v505_v13  ;;  %v178_v16 = vpop.f32.mrb[1].mxu0 }
 0x140   :  { %v179_v17 = vadd.f32 %v505_v13, %v178_v16 }
 0x141   :  { %v218_v20 = vmax.f32 %v184_v15, 0.0 }
 0x142   :  { %v617_v18 = vpop.f32.mrb[2].mxu0  ;;  %v217_v19 = vmax.f32 %v179_v17, 0.0 }
 0x143   :  { %v194_v21 = vadd.f32 %v617_v18, %v505_v13  ;;  %v188_v22 = vpop.f32.mrb[3].mxu0 }
 0x144   :  { %v189_v23 = vadd.f32 %v505_v13, %v188_v22  ;;  %656 = vmatprep.mubr.f32.mxu1 %v217_v19 }
 0x145   :  { %657 = vmatmul.mubr.f32.vlgmr.msra.gmra.mrb[0].mxu1 %v218_v20  ;;  %v220_v26 = vmax.f32 %v194_v21, 0.0 }
 0x146   :  { %v219_v24 = vmax.f32 %v189_v23, 0.0  ;;  %v620_v25 = vpop.f32.mrb[4].mxu0  ;;  %816 = vmatpush3.bf16.msra.mxu1 %v776_v59 }
 0x147   :  { %v204_v27 = vadd.f32 %v620_v25, %v505_v13  ;;  %v198_v28 = vpop.f32.mrb[5].mxu0  ;;  %809 = vmatprep.subr.bf16.mxu1 %v780_v61 }
 0x148   :  { %v199_v29 = vadd.f32 %v505_v13, %v198_v28  ;;  %659 = vmatprep.mubr.f32.mxu1 %v219_v24 }
 0x149   :  { %660 = vmatmul.mubr.f32.gmra.mrb[2].mxu1 %v220_v26  ;;  %v222_v32 = vmax.f32 %v204_v27, 0.0 }
 0x14a   :  { %v221_v30 = vmax.f32 %v199_v29, 0.0  ;;  %v623_v31 = vpop.f32.mrb[6].mxu0  ;;  %817 = vmatpush3.bf16.msra.mxu1 %v780_v61 }
 0x14b   :  { %v214_v33 = vadd.f32 %v623_v31, %v505_v13  ;;  %v208_v34 = vpop.f32.mrb[7].mxu0  ;;  %810 = vmatprep.subr.bf16.mxu1 %v784_v0 }
 0x14c   :  { %v209_v35 = vadd.f32 %v505_v13, %v208_v34  ;;  %662 = vmatprep.mubr.f32.mxu1 %v221_v30 }
 0x14d   :  { %663 = vmatmul.mubr.f32.gmra.mrb[4].mxu1 %v222_v32  ;;  %v224_v37 = vmax.f32 %v214_v33, 0.0 }
 0x14e   :  { %v223_v36 = vmax.f32 %v209_v35, 0.0  ;;  %818 = vmatpush3.bf16.msra.mxu1 %v784_v0 }
 0x14f   :  { %811 = vmatprep.subr.bf16.mxu1 %v788_v3 }
 0x150   :  { %665 = vmatprep.mubr.f32.mxu1 %v223_v36 }
 0x151   :  { %666 = vmatmul.mubr.f32.gmra.mrb[6].mxu1 %v224_v37 }
 0x152   :  { %819 = vmatpush3.bf16.msra.mxu1 %v788_v3 }
 0x153   :  { %812 = vmatprep.subr.bf16.mxu1 %v792_v6 }
 0x156   :  { %820 = vmatpush3.bf16.msra.mxu1 %v792_v6 }
 0x157   :  { %813 = vmatprep.subr.bf16.mxu1 %v796_v9 }
 0x15a   :  { %821 = vmatpush3.bf16.msra.mxu1 %v796_v9 }
 0x15b   :  { %814 = vmatprep.subr.bf16.mxu1 %v800_v12 }
 0x15e   :  { %822 = vmatpush3.bf16.msra.mxu1 %v800_v12 }
 0x15f   :  { %815 = vmatprep.subr.bf16.mxu1 %v804_v40 }
 0x162   :  { %823 = vmatpush3.bf16.msra.mxu1 %v804_v40 }
 0x218   :  { %v658_v42 = vpop.f32.mrb[0].mxu1 }
 0x219   :  { %v320_v43 = vadd.f32 %v658_v42, %v506_v41  ;;  %v314_v44 = vpop.f32.mrb[1].mxu1 }
 0x21a   :  { %v315_v45 = vadd.f32 %v506_v41, %v314_v44 }
 0x21b   :  { %v354_v48 = vmax.f32 %v320_v43, 0.0 }
 0x21c   :  { %v353_v46 = vmax.f32 %v315_v45, 0.0  ;;  %v661_v47 = vpop.f32.mrb[2].mxu1 }
 0x21d   :  { %v330_v49 = vadd.f32 %v661_v47, %v506_v41  ;;  %v324_v50 = vpop.f32.mrb[3].mxu1 }
 0x21e   :  { %v325_v51 = vadd.f32 %v506_v41, %v324_v50  ;;  %700 = vmatprep.mubr.f32.mxu0 %v353_v46 }
 0x21f   :  { %701 = vmatmul.mubr.f32.vlgmr.msra.gmra.mrb[8].mxu0 %v354_v48  ;;  %v356_v54 = vmax.f32 %v330_v49, 0.0 }
 0x220   :  { %v355_v52 = vmax.f32 %v325_v51, 0.0  ;;  %v664_v53 = vpop.f32.mrb[4].mxu1 }
 0x221   :  { %v340_v55 = vadd.f32 %v664_v53, %v506_v41  ;;  %v334_v56 = vpop.f32.mrb[5].mxu1 }
 0x222   :  { %v335_v57 = vadd.f32 %v506_v41, %v334_v56  ;;  %703 = vmatprep.mubr.f32.mxu0 %v355_v52 }
 0x223   :  { %704 = vmatmul.mubr.f32.gmra.mrb[10].mxu0 %v356_v54  ;;  %v358_v60 = vmax.f32 %v340_v55, 0.0 }
 0x224   :  { %v357_v58 = vmax.f32 %v335_v57, 0.0  ;;  %v667_v59 = vpop.f32.mrb[6].mxu1 }
 0x225   :  { %v350_v61 = vadd.f32 %v667_v59, %v506_v41  ;;  %v344_v62 = vpop.f32.mrb[7].mxu1 }
 0x226   :  { %v345_v63 = vadd.f32 %v506_v41, %v344_v62  ;;  %706 = vmatprep.mubr.f32.mxu1 %v357_v58 }
 0x227   :  { %707 = vmatmul.mubr.f32.vlgmr.msra.gmra.mrb[8].mxu1 %v358_v60  ;;  %v360_v1 = vmax.f32 %v350_v61, 0.0 }
 0x228   :  { %v359_v0 = vmax.f32 %v345_v63, 0.0 }
 0x22a   :  { %709 = vmatprep.mubr.f32.mxu1 %v359_v0 }
 0x22b   :  { %710 = vmatmul.mubr.f32.gmra.mrb[10].mxu1 %v360_v1 }
 0x2f2   :  { %v702_v3 = vpop.f32.mrb[8].mxu0 }
 0x2f3   :  { %v456_v4 = vadd.f32 %v702_v3, %v507_v2  ;;  %v450_v5 = vpop.f32.mrb[9].mxu0 }
 0x2f4   :  { %v451_v6 = vadd.f32 %v507_v2, %v450_v5 }
 0x2f5   :  { %491 = vst.msk [vmem:[%s1092_s7 + $0x8] sm:$0xff] %vm489_vm0, %v456_v4 }
 0x2f6   :  { %490 = vst.msk [vmem:[%s1092_s7] sm:$0xff] %vm489_vm0, %v451_v6  ;;  %v705_v7 = vpop.f32.mrb[10].mxu0 }
 0x2f7   :  { %v466_v8 = vadd.f32 %v705_v7, %v507_v2  ;;  %v460_v9 = vpop.f32.mrb[11].mxu0 }
 0x2f8   :  { %v461_v10 = vadd.f32 %v507_v2, %v460_v9 }
 0x2f9   :  { %493 = vst.msk [vmem:[%s1092_s7 + $0x18] sm:$0xff] %vm489_vm0, %v466_v8 }
 0x2fa   :  { %492 = vst.msk [vmem:[%s1092_s7 + $0x10] sm:$0xff] %vm489_vm0, %v461_v10  ;;  %v708_v11 = vpop.f32.mrb[8].mxu1 }
 0x2fb   :  { %v476_v12 = vadd.f32 %v708_v11, %v507_v2  ;;  %v470_v13 = vpop.f32.mrb[9].mxu1 }
 0x2fc   :  { %v471_v14 = vadd.f32 %v507_v2, %v470_v13 }
 0x2fd   :  { %495 = vst.msk [vmem:[%s1092_s7 + $0x28] sm:$0xff] %vm489_vm0, %v476_v12 }
 0x2fe   :  { %494 = vst.msk [vmem:[%s1092_s7 + $0x20] sm:$0xff] %vm489_vm0, %v471_v14  ;;  %v711_v15 = vpop.f32.mrb[10].mxu1 }
 0x2ff   :  { %v486_v16 = vadd.f32 %v711_v15, %v507_v2  ;;  %v480_v17 = vpop.f32.mrb[11].mxu1 }
 0x300   :  { %v481_v18 = vadd.f32 %v507_v2, %v480_v17 }
 0x301   :  { %497 = vst.msk [vmem:[%s1092_s7 + $0x38] sm:$0xff] %vm489_vm0, %v486_v16 }
 0x302   :  { %496 = vst.msk [vmem:[%s1092_s7 + $0x30] sm:$0xff] %vm489_vm0, %v481_v18 }
 0x303   :  { %502 = vsyncpa [#allocation3], 1 }
 0x304   :  { %503 = vsyncpa [#allocation5], 1 }
 0x305   :  { %504 = vsyncpa [#allocation8], 1 }

</bundles_post_ra>
